<compile_context>
chip_gen: v7x
topology: tpu7x:2x2x1
jax: 0.10.0
libtpu: 0.0.40
codegen_flags: <defaults>
</compile_context>

<pallas_src>
import functools
import math

import jax
import jax.numpy as jnp
from jax.experimental import pallas as pl
from jax.experimental.pallas import tpu as pltpu


def _build_pe_table(d_model: int, max_len: int) -> jnp.ndarray:
    """Deterministic sinusoidal table, identical to the PyTorch __init__."""
    position = jnp.arange(0, max_len, dtype=jnp.float32)[:, None]          # (max_len, 1)
    div_term = jnp.exp(
        jnp.arange(0, d_model, 2, dtype=jnp.float32) * (-math.log(10000.0) / d_model)
    )                                                                       # (d_model/2,)
    pe = jnp.zeros((max_len, d_model), dtype=jnp.float32)
    pe = pe.at[:, 0::2].set(jnp.sin(position * div_term))
    pe = pe.at[:, 1::2].set(jnp.cos(position * div_term))
    return pe[None, :, :]                                                   # (1, max_len, d_model)


def _pe_add_kernel(x_ref, pe_ref, o_ref):
    # x_ref: (TM, C) tile; pe_ref: (1, C) resident row, broadcasts over sublanes.
    o_ref[...] = x_ref[...] + pe_ref[...]


def _lane_dense_layout(S: int, B: int, D: int):
    """Pick a 2-D (rows, cols) reshape of (S, B, D) whose last dim is a multiple
    of 128 when possible.  cols is always a multiple of D so the pe pattern
    repeats exactly `reps = cols // D` times per reshaped row."""
    total = S * B * D
    if D % 128 == 0:
        return S * B, D, 1
    lcm = (D * 128) // math.gcd(D, 128)
    if total % lcm == 0:
        return total // lcm, lcm, lcm // D
    # Fallback: correct but not lane-dense (masked partial stores on last dim).
    return S * B, D, 1


def _choose_tile_rows(n_rows: int, row_bytes: int, target_bytes: int = 2 << 20) -> int:
    """~2 MiB row tiles; row count a multiple of 8 (or the full extent) so the
    (8, 128) block constraint is satisfied on every generation."""
    if n_rows <= 8:
        return n_rows
    tm = max(8, (target_bytes // max(row_bytes, 1)) // 8 * 8)
    return n_rows if tm >= n_rows else tm


@jax.jit
def positional_encoding_forward(x: jnp.ndarray, pe: jnp.ndarray) -> jnp.ndarray:
    """x: (S, B, D); pe: (1, max_len, D).  Returns x + pe[:, S, :] (Dropout p=0 == id)."""
    S, B, D = x.shape
    max_len = pe.shape[1]
    if S >= max_len:
        # PyTorch would raise an index error here; JAX would silently clamp.
        raise ValueError(f"seq len {S} must be < max_len {max_len} for pe[:, S, :].")

    # Exact PyTorch indexing: a single row at index == S, shape (1, D).
    pe_row = pe[:, S, :].astype(x.dtype)                                    # (1, D)

    n_rows, n_cols, reps = _lane_dense_layout(S, B, D)
    x2 = x.reshape(n_rows, n_cols)
    pe_slab = jnp.tile(pe_row, (1, reps)) if reps > 1 else pe_row           # (1, n_cols)

    tm = _choose_tile_rows(n_rows, n_cols * x.dtype.itemsize)
    grid = (pl.cdiv(n_rows, tm),)

    out2 = pl.pallas_call(
        _pe_add_kernel,
        out_shape=jax.ShapeDtypeStruct((n_rows, n_cols), x.dtype),
        grid_spec=pltpu.PrefetchScalarGridSpec(
            num_scalar_prefetch=0,
            grid=grid,
            in_specs=[
                pl.BlockSpec((tm, n_cols), lambda i: (i, 0)),    # streamed x tiles
                pl.BlockSpec((1, n_cols), lambda i: (0, 0)),     # resident pe row
            ],
            out_specs=pl.BlockSpec((tm, n_cols), lambda i: (i, 0)),
        ),
        compiler_params=pltpu.CompilerParams(
            dimension_semantics=("parallel",),                   # megacore-shard rows on v7x
        ),
        input_output_aliases={0: 0},                             # in-place-safe elementwise add
    )(x2, pe_slab)

    # Dropout(p=0.0) is the identity.
    # TODO(synk): for p > 0 in training mode, add pltpu.prng_seed +
    # pltpu.stateful_bernoulli masking inside the kernel.
    return out2.reshape(S, B, D)


if __name__ == "__main__":
    # Small shapes matching the module (seq-first layout: (S, B, D)).
    d_model = 32
    max_len = 64
    seq = 8
    batch = 2

    key = jax.random.PRNGKey(0)
    x = jax.random.normal(key, (seq, batch, d_model), dtype=jnp.float32)
    pe = _build_pe_table(d_model, max_len)

    ref = x + pe[:, seq, :].reshape(1, 1, d_model)               # plain-JAX reference
    out = jax.block_until_ready(positional_encoding_forward(x, pe))
    assert out.shape == x.shape
    assert jnp.allclose(out, ref, atol=1e-6), "mismatch vs reference (small-D lane-dense path)"

    # Second check: D a multiple of 128 with a multi-tile, pipelined grid.
    d2, len2, s2, b2 = 128, 2500, 2048, 4
    x_b = jax.random.normal(jax.random.PRNGKey(1), (s2, b2, d2), dtype=jnp.float32)
    pe_b = _build_pe_table(d2, len2)
    ref_b = x_b + pe_b[:, s2, :].reshape(1, 1, d2)
    out_b = jax.block_until_ready(positional_encoding_forward(x_b, pe_b))
    assert jnp.allclose(out_b, ref_b, atol=1e-6), "mismatch vs reference (D=128 tiled path)"

    print("KERNEL_OK")
</pallas_src>

<mosaic_0001>
module attributes {stable_mosaic.version = 11 : i64} {
  func.func @_pe_add_kernel(%arg0: i32, %arg1: memref<4x128xf32, #tpu.memory_space<vmem>>, %arg2: memref<1x128xf32, #tpu.memory_space<vmem>>, %arg3: memref<4x128xf32, #tpu.memory_space<vmem>>) attributes {dimension_semantics = [#tpu.dimension_semantics<parallel>], iteration_bounds = array<i64: 1>, scalar_prefetch = 0 : i64, scratch_operands = 0 : i64, tpu.core_type = #tpu.core_type<tc>, window_params = [{transform_indices = @transform_0, window_bounds = array<i64: 4, 128>}, {pipeline_mode = #tpu.pipeline_mode<synchronous>, transform_indices = @transform_1, window_bounds = array<i64: 1, 128>}, {transform_indices = @transform_2, window_bounds = array<i64: 4, 128>}]} {
    %c0 = arith.constant 0 : index
    %c0_0 = arith.constant 0 : index
    %0 = vector.load %arg1[%c0, %c0_0] : memref<4x128xf32, #tpu.memory_space<vmem>>, vector<4x128xf32>
    %c0_1 = arith.constant 0 : index
    %c0_2 = arith.constant 0 : index
    %1 = vector.load %arg2[%c0_1, %c0_2] : memref<1x128xf32, #tpu.memory_space<vmem>>, vector<1x128xf32>
    %2 = vector.broadcast %1 : vector<1x128xf32> to vector<4x128xf32>
    %3 = arith.addf %0, %2 : vector<4x128xf32>
    %c0_3 = arith.constant 0 : index
    %c0_4 = arith.constant 0 : index
    %4 = vector.load %arg3[%c0_3, %c0_4] : memref<4x128xf32, #tpu.memory_space<vmem>>, vector<4x128xf32>
    tpu.vector_store %arg3[%c0_3, %c0_4], %3 {strides = array<i32>} : memref<4x128xf32, #tpu.memory_space<vmem>>, vector<4x128xf32>,
    return
  }
  func.func @transform_0(%arg0: i32) -> (i32, i32) {
    %c0_i32 = arith.constant 0 : i32
    %c0_i32_0 = arith.constant 0 : i32
    return %arg0, %c0_i32 : i32, i32
  }
  func.func @transform_1(%arg0: i32) -> (i32, i32) {
    %c0_i32 = arith.constant 0 : i32
    %c0_i32_0 = arith.constant 0 : i32
    %c0_i32_1 = arith.constant 0 : i32
    return %c0_i32, %c0_i32_0 : i32, i32
  }
  func.func @transform_2(%arg0: i32) -> (i32, i32) {
    %c0_i32 = arith.constant 0 : i32
    %c0_i32_0 = arith.constant 0 : i32
    return %arg0, %c0_i32 : i32, i32
  }
}

</mosaic_0001>

<bundles_post_ra>
// kernel: positional_encoding_forward.1
= control target key start
LH: loop header
LB: loop body
LE: loop exit
PB: predicated region body
PF: predicated region fallthrough
CT: control target
= control target key end

     0   :  { %s50_s0 = inlined_call_operand.vmem [shape: f32[4,128], index: 0, kind: input, shape index: {}, may-alias: {0,2}]   ;;  %s51_s1 = inlined_call_operand.vmem [shape: f32[1,128], index: 1, kind: input, shape index: {}]   ;;  %s52_s2 = inlined_call_operand.vmem [shape: f32[4,128], index: 2, kind: output, shape index: {}, may-alias: {0,2}]  }
   0x1   :  { %v11_v0 = vld [vmem:[%s50_s0] sm:$0xf] }
   0x2   :  { %v25_v1 = vld [vmem:[%s51_s1] ss:$0 sm:$0xff] }
   0x3   :  { %v19_v2 = vadd.f32 %v25_v1, %v11_v0 }
   0x5   :  { %20 = vst [vmem:[%s52_s2] sm:$0xf] %v19_v2 }

</bundles_post_ra>
